<compile_context>
chip_gen: v7x
topology: tpu7x:2x2x1
jax: 0.10.0
libtpu: 0.0.40
codegen_flags: <defaults>
</compile_context>

<pallas_src>
import math

import jax
import jax.numpy as jnp
from jax.experimental import pallas as pl
from jax.experimental.pallas import tpu as pltpu


def _make_pe(length: int, dim: int, dtype=jnp.float32) -> jnp.ndarray:
    """Deterministic sinusoidal positional-encoding table, shape (length, dim)."""
    assert dim % 2 == 0, "Posi_Enconding requires an even feature dim"
    position = jnp.arange(0, length, dtype=jnp.float32)[:, None]           # (len, 1)
    div_term = jnp.exp(
        jnp.arange(0, dim, 2, dtype=jnp.float32) * -(math.log(10000.0) / dim)
    )                                                                       # (dim//2,)
    angles = position * div_term                                            # (len, dim//2)
    pe = jnp.zeros((length, dim), dtype=jnp.float32)
    pe = pe.at[:, 0::2].set(jnp.sin(angles))
    pe = pe.at[:, 1::2].set(jnp.cos(angles))
    return pe.astype(dtype)


def _pe_add_kernel(x_ref, pe_ref, o_ref):
    # x_ref: (rt, ct) lane-dense tile; pe_ref: (1, ct) PE slice for this column block.
    # Plain 2D broadcast add -> full-width unmasked vector stores.
    o_ref[...] = x_ref[...] + pe_ref[...]


def _vmem_budget_and_target():
    """Return (VMEM budget for the pipeline, per-buffer block-size target)."""
    vmem_cap = 64 << 20                          # conservative default (v7x-sized)
    try:
        info = pltpu.get_tpu_info()
        vmem_cap = int(getattr(info, "vmem_capacity_bytes", vmem_cap))
    except Exception:
        pass
    if vmem_cap >= (96 << 20):                   # v5e / v6e: 128 MiB physical VMEM
        return 64 << 20, 4 << 20
    return 48 << 20, 2 << 20                     # v7x: 64 MiB physical VMEM


def _choose_blocks(n_rows, n_cols, itemsize, target_bytes, min_steps):
    """Pick (row_block, col_block) tile sizes.

    Row blocks align to the packed-sublane tile of the dtype; column blocks are
    128-lane multiples so every load/store stays full-width.  A (row_align, ct)
    tile always fits within target_bytes, and the grid is guaranteed to have at
    least `min_steps` total steps when the data allows it.
    """
    row_align = max(8, 32 // itemsize)           # 8 f32, 16 bf16, 32 int8/fp8

    # Column blocking: keep an aligned (row_align, ct) tile within the target.
    max_ct = max(128, (target_bytes // (itemsize * row_align)) // 128 * 128)
    ct = n_cols if n_cols <= max_ct else max_ct
    n_col_blocks = pl.cdiv(n_cols, ct)

    # Row blocking: ~target bytes per buffer ...
    rt = max(row_align, (target_bytes // (ct * itemsize)) // row_align * row_align)

    # ... but guarantee enough total grid steps for DMA overlap / megacore split.
    needed_row_blocks = max(1, pl.cdiv(min_steps, n_col_blocks))
    if needed_row_blocks > 1:
        rt_cap = pl.cdiv(n_rows, needed_row_blocks)
        rt_cap = max(row_align, (rt_cap // row_align) * row_align)
        rt = min(rt, rt_cap)

    rt = min(rt, n_rows)                         # rt == n_rows is always legal
    return int(rt), int(ct)


def posi_encoding_forward(x, pe_row_2d, *, min_pallas_bytes=512 * 1024,
                          donate_x=False):
    """y = x + pe (broadcast over leading dims).  pe_row_2d: (1, S*D) in x.dtype."""
    orig_shape = x.shape
    S, D = int(x.shape[-2]), int(x.shape[-1])
    SD = S * D
    assert pe_row_2d.shape == (1, SD), (pe_row_2d.shape, (1, SD))

    B = 1
    for d in orig_shape[:-2]:
        B *= int(d)

    itemsize = jnp.dtype(x.dtype).itemsize
    total_bytes = B * SD * itemsize

    # Tiny-input fast path: kernel launch + DMA setup dominates at this size; a
    # fused XLA broadcast-add is strictly faster on every TPU generation.
    if total_bytes < min_pallas_bytes:
        return (x.reshape(B, SD) + pe_row_2d).reshape(orig_shape)

    x2 = x.reshape(B, SD)

    budget, target_bytes = _vmem_budget_and_target()
    if total_bytes >= (16 << 20):
        min_steps = 8          # 2 TensorCores x >=4 pipelined steps (v7x megacore)
    elif total_bytes >= (4 << 20):
        min_steps = 4          # enough steps for prefetch / writeback overlap
    else:
        min_steps = 1
    rt, ct = _choose_blocks(B, SD, itemsize, target_bytes, min_steps)

    grid = (pl.cdiv(B, rt), pl.cdiv(SD, ct))

    # x-in and out blocks are each double-buffered by the pipeline; PE slice is tiny.
    block_bytes = rt * ct * itemsize
    vmem_needed = 4 * block_bytes + 2 * ct * itemsize + (1 << 20)
    vmem_limit = int(min(budget, max(vmem_needed, 16 << 20)))
    vmem_limit = max(vmem_limit, int(vmem_needed))   # never clip below the tiling's need

    out = pl.pallas_call(
        _pe_add_kernel,
        out_shape=jax.ShapeDtypeStruct((B, SD), x.dtype),
        grid_spec=pltpu.PrefetchScalarGridSpec(
            num_scalar_prefetch=0,
            grid=grid,
            in_specs=[
                pl.BlockSpec((rt, ct), lambda i, j: (i, j)),   # x tile
                pl.BlockSpec((1, ct), lambda i, j: (0, j)),    # PE slice per column block
            ],
            out_specs=pl.BlockSpec((rt, ct), lambda i, j: (i, j)),
        ),
        compiler_params=pltpu.CompilerParams(
            dimension_semantics=("parallel", "parallel"),
            vmem_limit_bytes=vmem_limit,
        ),
        input_output_aliases=({0: 0} if donate_x else {}),
    )(x2, pe_row_2d)

    return out.reshape(orig_shape)


class PosiEncoding:
    """JAX/Pallas equivalent of the PyTorch Posi_Enconding module (eval mode)."""

    def __init__(self, dim, dropout=None, length=62):
        self.dim = int(dim)
        self.length = int(length)
        self.dropout = dropout            # identity in eval mode (see TODO above)
        self.pe = _make_pe(self.length, self.dim)     # (length, dim) float32
        self._pe_rows = {}                # cache: (S, dtype name) -> (1, S*dim) row

    def _pe_row(self, S, dtype):
        key = (int(S), jnp.dtype(dtype).name)
        row = self._pe_rows.get(key)
        if row is None:
            assert S <= self.length, f"seq len {S} exceeds PE table length {self.length}"
            # Note: for bf16 inputs the add is done in bf16 (slightly different
            # rounding than f32-add-then-cast); negligible for positional encodings.
            row = self.pe[:S].astype(dtype).reshape(1, int(S) * self.dim)
            self._pe_rows[key] = row
        return row

    def __call__(self, x, *, min_pallas_bytes=512 * 1024, donate_x=False):
        S, D = x.shape[-2], x.shape[-1]
        assert int(D) == self.dim, f"feature dim {D} != module dim {self.dim}"
        pe_row = self._pe_row(S, x.dtype)
        return posi_encoding_forward(
            x, pe_row, min_pallas_bytes=min_pallas_bytes, donate_x=donate_x
        )


if __name__ == "__main__":
    dim = 32
    seq = 8
    module = PosiEncoding(dim, dropout=None, length=62)

    key = jax.random.PRNGKey(0)
    k1, k2 = jax.random.split(key)

    # Module-consistent small shape: (batch=2, channels=4, seq=8, dim=32).
    x_small = jax.random.normal(k1, (2, 4, seq, dim), dtype=jnp.float32)
    ref_small = x_small + module.pe[:seq]

    # 1) Default call: tiny input takes the fused-XLA fast path.
    y_fast = jax.block_until_ready(module(x_small))
    assert y_fast.shape == x_small.shape
    assert jnp.allclose(y_fast, ref_small, atol=1e-6), "fast-path mismatch"

    # 2) Force the Pallas kernel at the module's actual (small) shape.
    y_pallas = jax.block_until_ready(module(x_small, min_pallas_bytes=0))
    assert y_pallas.shape == x_small.shape
    assert jnp.allclose(y_pallas, ref_small, atol=1e-6), "pallas (small) mismatch"

    # 3) Larger input: exercises the multi-step pipelined / megacore tiling path.
    x_big = jax.random.normal(k2, (256, 16, seq, dim), dtype=jnp.float32)
    ref_big = x_big + module.pe[:seq]
    y_big = jax.block_until_ready(module(x_big))
    assert y_big.shape == x_big.shape
    assert jnp.allclose(y_big, ref_big, atol=1e-6), "pallas (large) mismatch"

    print("KERNEL_OK")
</pallas_src>

<mosaic_0001>
module attributes {stable_mosaic.version = 11 : i64} {
  func.func @_pe_add_kernel(%arg0: i32, %arg1: i32, %arg2: memref<8x256xf32, #tpu.memory_space<vmem>>, %arg3: memref<1x256xf32, #tpu.memory_space<vmem>>, %arg4: memref<8x256xf32, #tpu.memory_space<vmem>>) attributes {dimension_semantics = [#tpu.dimension_semantics<parallel>, #tpu.dimension_semantics<parallel>], iteration_bounds = array<i64: 1, 1>, scalar_prefetch = 0 : i64, scratch_operands = 0 : i64, tpu.core_type = #tpu.core_type<tc>, window_params = [{transform_indices = @transform_0, window_bounds = array<i64: 8, 256>}, {transform_indices = @transform_1, window_bounds = array<i64: 1, 256>}, {transform_indices = @transform_2, window_bounds = array<i64: 8, 256>}]} {
    %c0 = arith.constant 0 : index
    %c0_0 = arith.constant 0 : index
    %0 = vector.load %arg2[%c0, %c0_0] : memref<8x256xf32, #tpu.memory_space<vmem>>, vector<8x256xf32>
    %c0_1 = arith.constant 0 : index
    %c0_2 = arith.constant 0 : index
    %1 = vector.load %arg3[%c0_1, %c0_2] : memref<1x256xf32, #tpu.memory_space<vmem>>, vector<1x256xf32>
    %2 = vector.broadcast %1 : vector<1x256xf32> to vector<8x256xf32>
    %3 = arith.addf %0, %2 : vector<8x256xf32>
    %c0_3 = arith.constant 0 : index
    %c0_4 = arith.constant 0 : index
    %4 = vector.load %arg4[%c0_3, %c0_4] : memref<8x256xf32, #tpu.memory_space<vmem>>, vector<8x256xf32>
    tpu.vector_store %arg4[%c0_3, %c0_4], %3 {strides = array<i32>} : memref<8x256xf32, #tpu.memory_space<vmem>>, vector<8x256xf32>,
    return
  }
  func.func @transform_0(%arg0: i32, %arg1: i32) -> (i32, i32) {
    %c0_i32 = arith.constant 0 : i32
    return %arg0, %arg1 : i32, i32
  }
  func.func @transform_1(%arg0: i32, %arg1: i32) -> (i32, i32) {
    %c0_i32 = arith.constant 0 : i32
    %c0_i32_0 = arith.constant 0 : i32
    return %c0_i32, %arg1 : i32, i32
  }
  func.func @transform_2(%arg0: i32, %arg1: i32) -> (i32, i32) {
    %c0_i32 = arith.constant 0 : i32
    return %arg0, %arg1 : i32, i32
  }
}

</mosaic_0001>

<bundles_post_ra>
// kernel: tpu_custom_call.1
= control target key start
LH: loop header
LB: loop body
LE: loop exit
PB: predicated region body
PF: predicated region fallthrough
CT: control target
= control target key end

     0   :  { %7 = vsyncpa [#allocation3], 0  ;;  %s151_s0 = inlined_call_operand.hbm [shape: f32[8,256], index: 0, kind: input, shape index: {}]   ;;  %s152_s1 = inlined_call_operand.vmem [shape: f32[1,256], index: 1, kind: input, shape index: {}]   ;;  %s153_s2 = inlined_call_operand.hbm [shape: f32[8,256], index: 2, kind: output, shape index: {}]  }
   0x1   :  { %8 = vsyncpa [#allocation4], 0  ;;  %s107_s9 = smov [#allocation2]   ;;  %s59_s13 = scalar_lea.hbm %s151_s0, 256 }
   0x2   :  { %s15_s10 = sshll.u32 %s107_s9, 4  ;;  %p60_p0 = scmp.ne.s32.totalorder %s151_s0, %s59_s13  ;;  %s16_s10 = int_to_ptr.vmem [resolvable:$true] %s15_s10 }
   0x3   :  { %p63_p1 = scmp.lt.u32.totalorder %s59_s13, %s151_s0 }
   0x5   :  { %p65_p2 = pnand %p63_p1, %p60_p0 }
   0x7   :  { %68 = shalt.err (!%p65_p2)
}
   0x8   :  { %s69_s18 = scalar_lea.vmem %s16_s10, 256  ;;  %p74_p4 = scmp.lt.s32.totalorder %s16_s10, %s16_s10 }
   0x9   :  { %p70_p3 = scmp.ne.s32.totalorder %s16_s10, %s69_s18  ;;  %p75_p5 = scmp.lt.s32.totalorder %s69_s18, %s69_s18 }
   0xb   :  { %p76_p6 = por %p75_p5, %p74_p4 }
   0xd   :  { %p77_p7 = pnand %p76_p6, %p70_p3 }
   0xf   :  { %80 = shalt.err (!%p77_p7)
}
  0x10   :  { %18 = dma.hbm_to_vmem [thread:$0]  %s151_s0, 256, %s16_s10, [#allocation3]  }
  0x11   :  { %103 = dma.done.wait [#allocation3], 256  }
  0x12   :  { %104 = vsyncadd [#allocation3], 4294967040  ;;  %v28_v0 = vlaneseq  ;;  %v24_v4 = vld [vmem:[#allocation2] sm:$0xff]  ;;  %v25_v6 = vld [vmem:[#allocation2 + $0x8] sm:$0xff]  ;;  %s108_s23 = smov [#allocation5]  }
  0x13   :  { %v26_v5 = vld [vmem:[%s152_s1] sm:$0x3]  ;;  %s48_s24 = sshll.u32 %s108_s23, 4  ;;  %s49_s24 = int_to_ptr.vmem [resolvable:$true] %s48_s24 }
  0x14   :  { %v29_v1 = vshrl.u32 %v28_v0, 7  ;;  %s81_s0 = scalar_lea.vmem %s49_s24, 256  ;;  %p86_p9 = scmp.lt.s32.totalorder %s49_s24, %s49_s24 }
  0x15   :  { %p82_p8 = scmp.ne.s32.totalorder %s49_s24, %s81_s0  ;;  %p87_p10 = scmp.lt.s32.totalorder %s81_s0, %s81_s0 }
  0x16   :  { %v30_v2 = vsub.s32 0, %v29_v1  ;;  %v34_v3 = vsub.s32 1, %v29_v1 }
  0x17   :  { %p88_p11 = por %p87_p10, %p86_p9 }
  0x18   :  { %v31_v7 = vrot.slane %v26_v5, %v30_v2  ;;  %v35_v8 = vrot.slane %v26_v5, %v34_v3 }
  0x19   :  { %p89_p12 = pnand %p88_p11, %p82_p8 }
  0x1a   :  { %v38_v9 = vadd.f32 %v31_v7, %v24_v4  ;;  %v39_v10 = vadd.f32 %v35_v8, %v25_v6 }
  0x1c   :  { %40 = vst [vmem:[#allocation5] sm:$0xff] %v38_v9  ;;  %41 = vst [vmem:[#allocation5 + $0x8] sm:$0xff] %v39_v10 }
  0x1d   :  { %92 = shalt.err (!%p89_p12)
}
  0x1e   :  { %s93_s1 = scalar_lea.hbm %s153_s2, 256 }
  0x1f   :  { %p94_p13 = scmp.ne.s32.totalorder %s153_s2, %s93_s1  ;;  %p97_p0 = scmp.lt.u32.totalorder %s93_s1, %s153_s2 }
  0x21   :  { %p99_p1 = pnand %p97_p0, %p94_p13 }
  0x23   :  { %102 = shalt.err (!%p99_p1)
}
  0x24   :  { %51 = dma.vmem_to_hbm [thread:$0]  %s49_s24, 256, %s153_s2, [#allocation4]  }
  0x25   :  { %105 = dma.done.wait [#allocation4], 256  }
  0x26   :  { %106 = vsyncadd [#allocation4], 4294967040 }
  0x27   :  { %55 = vsyncpa [#allocation3], 1 }
  0x28   :  { %56 = vsyncpa [#allocation4], 1 }

</bundles_post_ra>
